<compile_context>
chip_gen: v7x
topology: tpu7x:2x2x1
jax: 0.10.0
libtpu: 0.0.40
codegen_flags: <defaults>
</compile_context>

<pallas_src>
import jax
import jax.numpy as jnp
from jax.experimental import pallas as pl
from jax.experimental.pallas import tpu as pltpu


def cnn_tabular_kernel(x_ref, w1_ref, b1_ref, w2_ref, b2_ref,
                       fc1w_ref, fc1b_ref, fc2w_ref, fc2b_ref,
                       fc3w_ref, fc3b_ref, out_ref, hpad_ref):
    TB = x_ref.shape[0]
    L = x_ref.shape[1] - 2          # input pre-padded to L+2 in the wrapper
    w1 = w1_ref[...]                # (3, 1, C1)
    w2 = w2_ref[...]                # (3, C1, C2)
    C1 = w1.shape[2]
    C2 = w2.shape[2]
    L1 = L // 2
    L2 = L1 // 2

    def maxpool2(h):
        # MaxPool1d(kernel=2, stride=2) along the length axis.
        b_, l_, c_ = h.shape
        hr = h.reshape(b_, l_ // 2, 2, c_)
        return jnp.maximum(hr[:, :, 0, :], hr[:, :, 1, :])

    # ---- conv1 (Cin=1 -> C1, k=3, pad=1): VPU broadcast multiply-accumulate ----
    xp = x_ref[...]                                            # (TB, L+2, 1)
    h = (xp[:, 0:L, :] * w1[0]
         + xp[:, 1:L + 1, :] * w1[1]
         + xp[:, 2:L + 2, :] * w1[2])                          # (TB, L, C1) f32
    h = jnp.maximum(h + b1_ref[...], 0.0)
    h = maxpool2(h)                                            # (TB, L1, C1)

    # ---- conv2 (C1 -> C2, k=3, pad=1): pad via VMEM scratch, 3 batched matmuls ----
    hpad_ref[:, 0:1, :] = jnp.zeros((TB, 1, C1), jnp.float32)
    hpad_ref[:, L1 + 1:L1 + 2, :] = jnp.zeros((TB, 1, C1), jnp.float32)
    hpad_ref[:, 1:L1 + 1, :] = h
    hp = hpad_ref[...]                                         # (TB, L1+2, C1)

    g = jnp.zeros((TB * L1, C2), jnp.float32)
    for k in range(3):                                         # M = TB*L1 per matmul
        hk = hp[:, k:k + L1, :].reshape(TB * L1, C1)
        g = g + jnp.dot(hk, w2[k], preferred_element_type=jnp.float32)
    g = g.reshape(TB, L1, C2)
    g = jnp.maximum(g + b2_ref[...], 0.0)
    g = maxpool2(g)                                            # (TB, L2, C2)

    # ---- fc1: single matmul over the flattened (L2*C2) features ----
    gf = g.reshape(TB, L2 * C2)                                # l-major, c-minor flatten
    z1 = jnp.maximum(
        jnp.dot(gf, fc1w_ref[...], preferred_element_type=jnp.float32) + fc1b_ref[...],
        0.0)

    # ---- fc2 + ReLU, fc3 (output padded to 128 lanes for a lane-dense store) ----
    z2 = jnp.maximum(
        jnp.dot(z1, fc2w_ref[...], preferred_element_type=jnp.float32) + fc2b_ref[...],
        0.0)
    out_ref[...] = (jnp.dot(z2, fc3w_ref[...], preferred_element_type=jnp.float32)
                    + fc3b_ref[...])


def cnn_tabular_forward(x_ncl, params, *, tile_b=256):
    """x_ncl: (B, 1, L) float32, matching the PyTorch NCL convention."""
    w1, b1, w2, b2, fw1, fb1, fw2, fb2, fw3, fb3 = params
    B, Cin, L = x_ncl.shape
    assert Cin == 1
    assert L % 4 == 0, "kernel assumes input_dim divisible by 4 (same as two pool(2))"
    C1, C2 = w1.shape[0], w2.shape[0]
    L1, L2 = L // 2, L // 4
    H1, H2 = fw1.shape[0], fw2.shape[0]
    F1 = C2 * L2
    OUT_PAD = 128                                    # lane-dense padded fc3 output width

    # --- batch tiling (multiple of 8 when gridded; full batch when small) ---
    TB = tile_b if B >= tile_b else B
    n_tiles = -(-B // TB)
    Bp = n_tiles * TB

    # --- glue: channels-last, pre-padded input and repacked weights (plain XLA) ---
    x_blc = jnp.transpose(x_ncl, (0, 2, 1))                            # (B, L, 1)
    x_pad = jnp.pad(x_blc, ((0, Bp - B), (1, 1), (0, 0)))              # (Bp, L+2, 1)

    w1k = jnp.transpose(w1, (2, 1, 0))                                 # (3, 1, C1)
    w2k = jnp.transpose(w2, (2, 1, 0))                                 # (3, C1, C2)
    # PyTorch flattens (B, C2, L2) channel-major: flat[c*L2 + l]. The kernel flattens
    # (B, L2, C2) l-major. Repack so kernel_w[l*C2 + c, h] = fw1[h, c*L2 + l].
    fw1k = jnp.transpose(fw1.reshape(H1, C2, L2), (2, 1, 0)).reshape(F1, H1)
    fw2k = jnp.transpose(fw2)                                          # (H1, H2)
    fw3k = jnp.zeros((H2, OUT_PAD), jnp.float32).at[:, 0:1].set(jnp.transpose(fw3))
    fb3k = jnp.zeros((1, OUT_PAD), jnp.float32).at[:, 0:1].set(fb3.reshape(1, 1))

    args = (x_pad,
            w1k, b1.reshape(1, C1),
            w2k, b2.reshape(1, C2),
            fw1k, fb1.reshape(1, H1),
            fw2k, fb2.reshape(1, H2),
            fw3k, fb3k)

    in_specs = [
        pl.BlockSpec((TB, L + 2, 1), lambda i: (i, 0, 0)),   # input: tiled over batch
        pl.BlockSpec((3, 1, C1), lambda i: (0, 0, 0)),       # weights: resident
        pl.BlockSpec((1, C1), lambda i: (0, 0)),
        pl.BlockSpec((3, C1, C2), lambda i: (0, 0, 0)),
        pl.BlockSpec((1, C2), lambda i: (0, 0)),
        pl.BlockSpec((F1, H1), lambda i: (0, 0)),
        pl.BlockSpec((1, H1), lambda i: (0, 0)),
        pl.BlockSpec((H1, H2), lambda i: (0, 0)),
        pl.BlockSpec((1, H2), lambda i: (0, 0)),
        pl.BlockSpec((H2, OUT_PAD), lambda i: (0, 0)),
        pl.BlockSpec((1, OUT_PAD), lambda i: (0, 0)),
    ]
    out_spec = pl.BlockSpec((TB, OUT_PAD), lambda i: (i, 0))

    out_padded = pl.pallas_call(
        cnn_tabular_kernel,
        out_shape=jax.ShapeDtypeStruct((Bp, OUT_PAD), jnp.float32),
        grid=(n_tiles,),
        in_specs=in_specs,
        out_specs=out_spec,
        scratch_shapes=[pltpu.VMEM((TB, L1 + 2, C1), jnp.float32)],
        compiler_params=pltpu.CompilerParams(dimension_semantics=("parallel",)),
    )(*args)
    return out_padded[:B, :1]


def init_params(key, input_dim):
    """Deterministic init mirroring nn.Conv1d / nn.Linear default shapes."""
    ks = jax.random.split(key, 10)

    def u(k, shape, fan_in):
        bound = 1.0 / (fan_in ** 0.5)
        return jax.random.uniform(k, shape, jnp.float32, -bound, bound)

    conv_out = input_dim
    for _ in range(2):
        conv_out = ((conv_out + 2 * 1 - 3) // 1 + 1) // 2

    w1 = u(ks[0], (16, 1, 3), 1 * 3);     b1 = u(ks[1], (16,), 1 * 3)
    w2 = u(ks[2], (32, 16, 3), 16 * 3);   b2 = u(ks[3], (32,), 16 * 3)
    fin1 = 32 * conv_out
    fw1 = u(ks[4], (128, fin1), fin1);    fb1 = u(ks[5], (128,), fin1)
    fw2 = u(ks[6], (64, 128), 128);       fb2 = u(ks[7], (64,), 128)
    fw3 = u(ks[8], (1, 64), 64);          fb3 = u(ks[9], (1,), 64)
    return (w1, b1, w2, b2, fw1, fb1, fw2, fb2, fw3, fb3)


def reference_forward(x_ncl, params):
    """Pure-JAX replica of the PyTorch forward (NCL layout) for verification."""
    w1, b1, w2, b2, fw1, fb1, fw2, fb2, fw3, fb3 = params

    def conv1d(x, w, b):
        B_, _, L_ = x.shape
        xp = jnp.pad(x, ((0, 0), (0, 0), (1, 1)))
        taps = jnp.stack([xp[:, :, k:k + L_] for k in range(w.shape[-1])], axis=-1)
        return jnp.einsum('bclk,ock->bol', taps, w) + b[None, :, None]

    def pool(x):
        B_, C_, L_ = x.shape
        return x.reshape(B_, C_, L_ // 2, 2).max(axis=-1)

    h = pool(jax.nn.relu(conv1d(x_ncl, w1, b1)))
    h = pool(jax.nn.relu(conv1d(h, w2, b2)))
    flat = h.reshape(h.shape[0], -1)
    z = jax.nn.relu(flat @ fw1.T + fb1)
    z = jax.nn.relu(z @ fw2.T + fb2)
    return z @ fw3.T + fb3


if __name__ == "__main__":
    key = jax.random.PRNGKey(0)
    kx, kx2, kp = jax.random.split(key, 3)

    input_dim = 16                       # tabular feature count (L of the Conv1d)
    params = init_params(kp, input_dim)

    # Small single-tile case (batch fits one block).
    x = jax.random.normal(kx, (2, 1, input_dim), jnp.float32)       # NCL like PyTorch
    out = jax.block_until_ready(cnn_tabular_forward(x, params))
    ref = reference_forward(x, params)
    assert out.shape == (2, 1), out.shape
    if not jnp.allclose(out, ref, atol=1e-4, rtol=1e-4):
        raise AssertionError(f"Pallas/reference mismatch:\n{out}\nvs\n{ref}")

    # Multi-tile case to exercise the batch grid (TB=8, grid=(2,)).
    x2 = jax.random.normal(kx2, (16, 1, input_dim), jnp.float32)
    out2 = jax.block_until_ready(cnn_tabular_forward(x2, params, tile_b=8))
    ref2 = reference_forward(x2, params)
    if not jnp.allclose(out2, ref2, atol=1e-4, rtol=1e-4):
        raise AssertionError("Pallas/reference mismatch on gridded batch")

    print("KERNEL_OK")
</pallas_src>

<mosaic_0001>
module attributes {stable_mosaic.version = 11 : i64} {
  func.func @cnn_tabular_kernel(%arg0: i32, %arg1: memref<2x18x1xf32, #tpu.memory_space<vmem>>, %arg2: memref<3x1x16xf32, #tpu.memory_space<vmem>>, %arg3: memref<1x16xf32, #tpu.memory_space<vmem>>, %arg4: memref<3x16x32xf32, #tpu.memory_space<vmem>>, %arg5: memref<1x32xf32, #tpu.memory_space<vmem>>, %arg6: memref<128x128xf32, #tpu.memory_space<vmem>>, %arg7: memref<1x128xf32, #tpu.memory_space<vmem>>, %arg8: memref<128x64xf32, #tpu.memory_space<vmem>>, %arg9: memref<1x64xf32, #tpu.memory_space<vmem>>, %arg10: memref<64x128xf32, #tpu.memory_space<vmem>>, %arg11: memref<1x128xf32, #tpu.memory_space<vmem>>, %arg12: memref<2x128xf32, #tpu.memory_space<vmem>>, %arg13: memref<2x10x16xf32, #tpu.memory_space<vmem>>) attributes {dimension_semantics = [#tpu.dimension_semantics<parallel>], iteration_bounds = array<i64: 1>, scalar_prefetch = 0 : i64, scratch_operands = 1 : i64, tpu.core_type = #tpu.core_type<tc>, window_params = [{transform_indices = @transform_0, window_bounds = array<i64: 2, 18, 1>}, {pipeline_mode = #tpu.pipeline_mode<synchronous>, transform_indices = @transform_1, window_bounds = array<i64: 3, 1, 16>}, {pipeline_mode = #tpu.pipeline_mode<synchronous>, transform_indices = @transform_2, window_bounds = array<i64: 1, 16>}, {pipeline_mode = #tpu.pipeline_mode<synchronous>, transform_indices = @transform_3, window_bounds = array<i64: 3, 16, 32>}, {pipeline_mode = #tpu.pipeline_mode<synchronous>, transform_indices = @transform_4, window_bounds = array<i64: 1, 32>}, {pipeline_mode = #tpu.pipeline_mode<synchronous>, transform_indices = @transform_5, window_bounds = array<i64: 128, 128>}, {pipeline_mode = #tpu.pipeline_mode<synchronous>, transform_indices = @transform_6, window_bounds = array<i64: 1, 128>}, {pipeline_mode = #tpu.pipeline_mode<synchronous>, transform_indices = @transform_7, window_bounds = array<i64: 128, 64>}, {pipeline_mode = #tpu.pipeline_mode<synchronous>, transform_indices = @transform_8, window_bounds = array<i64: 1, 64>}, {pipeline_mode = #tpu.pipeline_mode<synchronous>, transform_indices = @transform_9, window_bounds = array<i64: 64, 128>}, {pipeline_mode = #tpu.pipeline_mode<synchronous>, transform_indices = @transform_10, window_bounds = array<i64: 1, 128>}, {transform_indices = @transform_11, window_bounds = array<i64: 2, 128>}]} {
    %c0 = arith.constant 0 : index
    %c0_0 = arith.constant 0 : index
    %c0_1 = arith.constant 0 : index
    %0 = vector.load %arg2[%c0, %c0_0, %c0_1] : memref<3x1x16xf32, #tpu.memory_space<vmem>>, vector<3x1x16xf32>
    %c0_2 = arith.constant 0 : index
    %c0_3 = arith.constant 0 : index
    %c0_4 = arith.constant 0 : index
    %1 = vector.load %arg4[%c0_2, %c0_3, %c0_4] : memref<3x16x32xf32, #tpu.memory_space<vmem>>, vector<3x16x32xf32>
    %c0_5 = arith.constant 0 : index
    %c0_6 = arith.constant 0 : index
    %c0_7 = arith.constant 0 : index
    %2 = vector.load %arg1[%c0_5, %c0_6, %c0_7] : memref<2x18x1xf32, #tpu.memory_space<vmem>>, vector<2x18x1xf32>
    %3 = vector.extract_strided_slice %2 {offsets = [0, 0, 0], sizes = [2, 16, 1], strides = [1, 1, 1]} : vector<2x18x1xf32> to vector<2x16x1xf32>
    %4 = vector.extract_strided_slice %0 {offsets = [0, 0, 0], sizes = [1, 1, 16], strides = [1, 1, 1]} : vector<3x1x16xf32> to vector<1x1x16xf32>
    %5 = vector.shape_cast %4 : vector<1x1x16xf32> to vector<1x16xf32>
    %6 = vector.shape_cast %5 : vector<1x16xf32> to vector<1x1x16xf32>
    %7 = vector.broadcast %3 : vector<2x16x1xf32> to vector<2x16x16xf32>
    %8 = vector.broadcast %6 : vector<1x1x16xf32> to vector<2x16x16xf32>
    %9 = arith.mulf %7, %8 : vector<2x16x16xf32>
    %10 = vector.extract_strided_slice %2 {offsets = [0, 1, 0], sizes = [2, 16, 1], strides = [1, 1, 1]} : vector<2x18x1xf32> to vector<2x16x1xf32>
    %11 = vector.extract_strided_slice %0 {offsets = [1, 0, 0], sizes = [1, 1, 16], strides = [1, 1, 1]} : vector<3x1x16xf32> to vector<1x1x16xf32>
    %12 = vector.shape_cast %11 : vector<1x1x16xf32> to vector<1x16xf32>
    %13 = vector.shape_cast %12 : vector<1x16xf32> to vector<1x1x16xf32>
    %14 = vector.broadcast %10 : vector<2x16x1xf32> to vector<2x16x16xf32>
    %15 = vector.broadcast %13 : vector<1x1x16xf32> to vector<2x16x16xf32>
    %16 = arith.mulf %14, %15 : vector<2x16x16xf32>
    %17 = arith.addf %9, %16 : vector<2x16x16xf32>
    %18 = vector.extract_strided_slice %2 {offsets = [0, 2, 0], sizes = [2, 16, 1], strides = [1, 1, 1]} : vector<2x18x1xf32> to vector<2x16x1xf32>
    %19 = vector.extract_strided_slice %0 {offsets = [2, 0, 0], sizes = [1, 1, 16], strides = [1, 1, 1]} : vector<3x1x16xf32> to vector<1x1x16xf32>
    %20 = vector.shape_cast %19 : vector<1x1x16xf32> to vector<1x16xf32>
    %21 = vector.shape_cast %20 : vector<1x16xf32> to vector<1x1x16xf32>
    %22 = vector.broadcast %18 : vector<2x16x1xf32> to vector<2x16x16xf32>
    %23 = vector.broadcast %21 : vector<1x1x16xf32> to vector<2x16x16xf32>
    %24 = arith.mulf %22, %23 : vector<2x16x16xf32>
    %25 = arith.addf %17, %24 : vector<2x16x16xf32>
    %c0_8 = arith.constant 0 : index
    %c0_9 = arith.constant 0 : index
    %26 = vector.load %arg3[%c0_8, %c0_9] : memref<1x16xf32, #tpu.memory_space<vmem>>, vector<1x16xf32>
    %27 = vector.shape_cast %26 : vector<1x16xf32> to vector<1x1x16xf32>
    %28 = vector.broadcast %27 : vector<1x1x16xf32> to vector<2x16x16xf32>
    %29 = arith.addf %25, %28 : vector<2x16x16xf32>
    %cst = arith.constant 0.000000e+00 : f32
    %30 = vector.broadcast %cst : f32 to vector<2x16x16xf32>
    %31 = arith.maximumf %29, %30 : vector<2x16x16xf32>
    %32 = vector.shape_cast %31 : vector<2x16x16xf32> to vector<2x8x2x16xf32>
    %33 = vector.extract_strided_slice %32 {offsets = [0, 0, 0, 0], sizes = [2, 8, 1, 16], strides = [1, 1, 1, 1]} : vector<2x8x2x16xf32> to vector<2x8x1x16xf32>
    %34 = vector.shape_cast %33 : vector<2x8x1x16xf32> to vector<2x8x16xf32>
    %35 = vector.extract_strided_slice %32 {offsets = [0, 0, 1, 0], sizes = [2, 8, 1, 16], strides = [1, 1, 1, 1]} : vector<2x8x2x16xf32> to vector<2x8x1x16xf32>
    %36 = vector.shape_cast %35 : vector<2x8x1x16xf32> to vector<2x8x16xf32>
    %37 = arith.maximumf %34, %36 : vector<2x8x16xf32>
    %cst_10 = arith.constant 0.000000e+00 : f32
    %38 = vector.broadcast %cst_10 : f32 to vector<2x1x16xf32>
    %c0_11 = arith.constant 0 : index
    %c0_12 = arith.constant 0 : index
    %c0_13 = arith.constant 0 : index
    %39 = vector.load %arg13[%c0_11, %c0_12, %c0_13] : memref<2x10x16xf32, #tpu.memory_space<vmem>>, vector<2x1x16xf32>
    tpu.vector_store %arg13[%c0_11, %c0_12, %c0_13], %38 {strides = array<i32>} : memref<2x10x16xf32, #tpu.memory_space<vmem>>, vector<2x1x16xf32>,
    %cst_14 = arith.constant 0.000000e+00 : f32
    %40 = vector.broadcast %cst_14 : f32 to vector<2x1x16xf32>
    %c0_15 = arith.constant 0 : index
    %c9 = arith.constant 9 : index
    %c0_16 = arith.constant 0 : index
    %41 = vector.load %arg13[%c0_15, %c9, %c0_16] : memref<2x10x16xf32, #tpu.memory_space<vmem>>, vector<2x1x16xf32>
    tpu.vector_store %arg13[%c0_15, %c9, %c0_16], %40 {strides = array<i32>} : memref<2x10x16xf32, #tpu.memory_space<vmem>>, vector<2x1x16xf32>,
    %c0_17 = arith.constant 0 : index
    %c1 = arith.constant 1 : index
    %c0_18 = arith.constant 0 : index
    %42 = vector.load %arg13[%c0_17, %c1, %c0_18] : memref<2x10x16xf32, #tpu.memory_space<vmem>>, vector<2x8x16xf32>
    tpu.vector_store %arg13[%c0_17, %c1, %c0_18], %37 {strides = array<i32>} : memref<2x10x16xf32, #tpu.memory_space<vmem>>, vector<2x8x16xf32>,
    %c0_19 = arith.constant 0 : index
    %c0_20 = arith.constant 0 : index
    %c0_21 = arith.constant 0 : index
    %43 = vector.load %arg13[%c0_19, %c0_20, %c0_21] : memref<2x10x16xf32, #tpu.memory_space<vmem>>, vector<2x10x16xf32>
    %cst_22 = arith.constant 0.000000e+00 : f32
    %44 = vector.broadcast %cst_22 : f32 to vector<16x32xf32>
    %45 = vector.extract_strided_slice %43 {offsets = [0, 0, 0], sizes = [2, 8, 16], strides = [1, 1, 1]} : vector<2x10x16xf32> to vector<2x8x16xf32>
    %46 = vector.shape_cast %45 : vector<2x8x16xf32> to vector<16x16xf32>
    %47 = vector.extract_strided_slice %1 {offsets = [0, 0, 0], sizes = [1, 16, 32], strides = [1, 1, 1]} : vector<3x16x32xf32> to vector<1x16x32xf32>
    %48 = vector.shape_cast %47 : vector<1x16x32xf32> to vector<16x32xf32>
    %cst_23 = arith.constant dense<0.000000e+00> : vector<16x32xf32>
    %49 = tpu.matmul %46, %48, %cst_23 {dimension_numbers = #tpu.dot_dimension_numbers<[1], [0], [0], [1], [0, 0, 1, 1], [], []>} : vector<16x16xf32>, vector<16x32xf32>, vector<16x32xf32> -> vector<16x32xf32>
    %50 = arith.addf %44, %49 : vector<16x32xf32>
    %51 = vector.extract_strided_slice %43 {offsets = [0, 1, 0], sizes = [2, 8, 16], strides = [1, 1, 1]} : vector<2x10x16xf32> to vector<2x8x16xf32>
    %52 = vector.shape_cast %51 : vector<2x8x16xf32> to vector<16x16xf32>
    %53 = vector.extract_strided_slice %1 {offsets = [1, 0, 0], sizes = [1, 16, 32], strides = [1, 1, 1]} : vector<3x16x32xf32> to vector<1x16x32xf32>
    %54 = vector.shape_cast %53 : vector<1x16x32xf32> to vector<16x32xf32>
    %cst_24 = arith.constant dense<0.000000e+00> : vector<16x32xf32>
    %55 = tpu.matmul %52, %54, %cst_24 {dimension_numbers = #tpu.dot_dimension_numbers<[1], [0], [0], [1], [0, 0, 1, 1], [], []>} : vector<16x16xf32>, vector<16x32xf32>, vector<16x32xf32> -> vector<16x32xf32>
    %56 = arith.addf %50, %55 : vector<16x32xf32>
    %57 = vector.extract_strided_slice %43 {offsets = [0, 2, 0], sizes = [2, 8, 16], strides = [1, 1, 1]} : vector<2x10x16xf32> to vector<2x8x16xf32>
    %58 = vector.shape_cast %57 : vector<2x8x16xf32> to vector<16x16xf32>
    %59 = vector.extract_strided_slice %1 {offsets = [2, 0, 0], sizes = [1, 16, 32], strides = [1, 1, 1]} : vector<3x16x32xf32> to vector<1x16x32xf32>
    %60 = vector.shape_cast %59 : vector<1x16x32xf32> to vector<16x32xf32>
    %cst_25 = arith.constant dense<0.000000e+00> : vector<16x32xf32>
    %61 = tpu.matmul %58, %60, %cst_25 {dimension_numbers = #tpu.dot_dimension_numbers<[1], [0], [0], [1], [0, 0, 1, 1], [], []>} : vector<16x16xf32>, vector<16x32xf32>, vector<16x32xf32> -> vector<16x32xf32>
    %62 = arith.addf %56, %61 : vector<16x32xf32>
    %63 = vector.shape_cast %62 : vector<16x32xf32> to vector<2x8x32xf32>
    %c0_26 = arith.constant 0 : index
    %c0_27 = arith.constant 0 : index
    %64 = vector.load %arg5[%c0_26, %c0_27] : memref<1x32xf32, #tpu.memory_space<vmem>>, vector<1x32xf32>
    %65 = vector.shape_cast %64 : vector<1x32xf32> to vector<1x1x32xf32>
    %66 = vector.broadcast %65 : vector<1x1x32xf32> to vector<2x8x32xf32>
    %67 = arith.addf %63, %66 : vector<2x8x32xf32>
    %cst_28 = arith.constant 0.000000e+00 : f32
    %68 = vector.broadcast %cst_28 : f32 to vector<2x8x32xf32>
    %69 = arith.maximumf %67, %68 : vector<2x8x32xf32>
    %70 = vector.shape_cast %69 : vector<2x8x32xf32> to vector<2x4x2x32xf32>
    %71 = vector.extract_strided_slice %70 {offsets = [0, 0, 0, 0], sizes = [2, 4, 1, 32], strides = [1, 1, 1, 1]} : vector<2x4x2x32xf32> to vector<2x4x1x32xf32>
    %72 = vector.shape_cast %71 : vector<2x4x1x32xf32> to vector<2x4x32xf32>
    %73 = vector.extract_strided_slice %70 {offsets = [0, 0, 1, 0], sizes = [2, 4, 1, 32], strides = [1, 1, 1, 1]} : vector<2x4x2x32xf32> to vector<2x4x1x32xf32>
    %74 = vector.shape_cast %73 : vector<2x4x1x32xf32> to vector<2x4x32xf32>
    %75 = arith.maximumf %72, %74 : vector<2x4x32xf32>
    %76 = vector.shape_cast %75 : vector<2x4x32xf32> to vector<2x128xf32>
    %c0_29 = arith.constant 0 : index
    %c0_30 = arith.constant 0 : index
    %77 = vector.load %arg6[%c0_29, %c0_30] : memref<128x128xf32, #tpu.memory_space<vmem>>, vector<128x128xf32>
    %cst_31 = arith.constant dense<0.000000e+00> : vector<2x128xf32>
    %78 = tpu.matmul %76, %77, %cst_31 {dimension_numbers = #tpu.dot_dimension_numbers<[1], [0], [0], [1], [0, 0, 1, 1], [], []>} : vector<2x128xf32>, vector<128x128xf32>, vector<2x128xf32> -> vector<2x128xf32>
    %c0_32 = arith.constant 0 : index
    %c0_33 = arith.constant 0 : index
    %79 = vector.load %arg7[%c0_32, %c0_33] : memref<1x128xf32, #tpu.memory_space<vmem>>, vector<1x128xf32>
    %80 = vector.broadcast %79 : vector<1x128xf32> to vector<2x128xf32>
    %81 = arith.addf %78, %80 : vector<2x128xf32>
    %cst_34 = arith.constant 0.000000e+00 : f32
    %82 = vector.broadcast %cst_34 : f32 to vector<2x128xf32>
    %83 = arith.maximumf %81, %82 : vector<2x128xf32>
    %c0_35 = arith.constant 0 : index
    %c0_36 = arith.constant 0 : index
    %84 = vector.load %arg8[%c0_35, %c0_36] : memref<128x64xf32, #tpu.memory_space<vmem>>, vector<128x64xf32>
    %cst_37 = arith.constant dense<0.000000e+00> : vector<2x64xf32>
    %85 = tpu.matmul %83, %84, %cst_37 {dimension_numbers = #tpu.dot_dimension_numbers<[1], [0], [0], [1], [0, 0, 1, 1], [], []>} : vector<2x128xf32>, vector<128x64xf32>, vector<2x64xf32> -> vector<2x64xf32>
    %c0_38 = arith.constant 0 : index
    %c0_39 = arith.constant 0 : index
    %86 = vector.load %arg9[%c0_38, %c0_39] : memref<1x64xf32, #tpu.memory_space<vmem>>, vector<1x64xf32>
    %87 = vector.broadcast %86 : vector<1x64xf32> to vector<2x64xf32>
    %88 = arith.addf %85, %87 : vector<2x64xf32>
    %cst_40 = arith.constant 0.000000e+00 : f32
    %89 = vector.broadcast %cst_40 : f32 to vector<2x64xf32>
    %90 = arith.maximumf %88, %89 : vector<2x64xf32>
    %c0_41 = arith.constant 0 : index
    %c0_42 = arith.constant 0 : index
    %91 = vector.load %arg10[%c0_41, %c0_42] : memref<64x128xf32, #tpu.memory_space<vmem>>, vector<64x128xf32>
    %cst_43 = arith.constant dense<0.000000e+00> : vector<2x128xf32>
    %92 = tpu.matmul %90, %91, %cst_43 {dimension_numbers = #tpu.dot_dimension_numbers<[1], [0], [0], [1], [0, 0, 1, 1], [], []>} : vector<2x64xf32>, vector<64x128xf32>, vector<2x128xf32> -> vector<2x128xf32>
    %c0_44 = arith.constant 0 : index
    %c0_45 = arith.constant 0 : index
    %93 = vector.load %arg11[%c0_44, %c0_45] : memref<1x128xf32, #tpu.memory_space<vmem>>, vector<1x128xf32>
    %94 = vector.broadcast %93 : vector<1x128xf32> to vector<2x128xf32>
    %95 = arith.addf %92, %94 : vector<2x128xf32>
    %c0_46 = arith.constant 0 : index
    %c0_47 = arith.constant 0 : index
    %96 = vector.load %arg12[%c0_46, %c0_47] : memref<2x128xf32, #tpu.memory_space<vmem>>, vector<2x128xf32>
    tpu.vector_store %arg12[%c0_46, %c0_47], %95 {strides = array<i32>} : memref<2x128xf32, #tpu.memory_space<vmem>>, vector<2x128xf32>,
    return
  }
  func.func @transform_0(%arg0: i32) -> (i32, i32, i32) {
    %c0_i32 = arith.constant 0 : i32
    %c0_i32_0 = arith.constant 0 : i32
    %c0_i32_1 = arith.constant 0 : i32
    return %arg0, %c0_i32, %c0_i32_0 : i32, i32, i32
  }
  func.func @transform_1(%arg0: i32) -> (i32, i32, i32) {
    %c0_i32 = arith.constant 0 : i32
    %c0_i32_0 = arith.constant 0 : i32
    %c0_i32_1 = arith.constant 0 : i32
    %c0_i32_2 = arith.constant 0 : i32
    return %c0_i32, %c0_i32_0, %c0_i32_1 : i32, i32, i32
  }
  func.func @transform_2(%arg0: i32) -> (i32, i32) {
    %c0_i32 = arith.constant 0 : i32
    %c0_i32_0 = arith.constant 0 : i32
    %c0_i32_1 = arith.constant 0 : i32
    return %c0_i32, %c0_i32_0 : i32, i32
  }
  func.func @transform_3(%arg0: i32) -> (i32, i32, i32) {
    %c0_i32 = arith.constant 0 : i32
    %c0_i32_0 = arith.constant 0 : i32
    %c0_i32_1 = arith.constant 0 : i32
    %c0_i32_2 = arith.constant 0 : i32
    return %c0_i32, %c0_i32_0, %c0_i32_1 : i32, i32, i32
  }
  func.func @transform_4(%arg0: i32) -> (i32, i32) {
    %c0_i32 = arith.constant 0 : i32
    %c0_i32_0 = arith.constant 0 : i32
    %c0_i32_1 = arith.constant 0 : i32
    return %c0_i32, %c0_i32_0 : i32, i32
  }
  func.func @transform_5(%arg0: i32) -> (i32, i32) {
    %c0_i32 = arith.constant 0 : i32
    %c0_i32_0 = arith.constant 0 : i32
    %c0_i32_1 = arith.constant 0 : i32
    return %c0_i32, %c0_i32_0 : i32, i32
  }
  func.func @transform_6(%arg0: i32) -> (i32, i32) {
    %c0_i32 = arith.constant 0 : i32
    %c0_i32_0 = arith.constant 0 : i32
    %c0_i32_1 = arith.constant 0 : i32
    return %c0_i32, %c0_i32_0 : i32, i32
  }
  func.func @transform_7(%arg0: i32) -> (i32, i32) {
    %c0_i32 = arith.constant 0 : i32
    %c0_i32_0 = arith.constant 0 : i32
    %c0_i32_1 = arith.constant 0 : i32
    return %c0_i32, %c0_i32_0 : i32, i32
  }
  func.func @transform_8(%arg0: i32) -> (i32, i32) {
    %c0_i32 = arith.constant 0 : i32
    %c0_i32_0 = arith.constant 0 : i32
    %c0_i32_1 = arith.constant 0 : i32
    return %c0_i32, %c0_i32_0 : i32, i32
  }
  func.func @transform_9(%arg0: i32) -> (i32, i32) {
    %c0_i32 = arith.constant 0 : i32
    %c0_i32_0 = arith.constant 0 : i32
    %c0_i32_1 = arith.constant 0 : i32
    return %c0_i32, %c0_i32_0 : i32, i32
  }
  func.func @transform_10(%arg0: i32) -> (i32, i32) {
    %c0_i32 = arith.constant 0 : i32
    %c0_i32_0 = arith.constant 0 : i32
    %c0_i32_1 = arith.constant 0 : i32
    return %c0_i32, %c0_i32_0 : i32, i32
  }
  func.func @transform_11(%arg0: i32) -> (i32, i32) {
    %c0_i32 = arith.constant 0 : i32
    %c0_i32_0 = arith.constant 0 : i32
    return %arg0, %c0_i32 : i32, i32
  }
}

</mosaic_0001>

<bundles_post_ra>
// kernel: tpu_custom_call.1
= control target key start
LH: loop header
LB: loop body
LE: loop exit
PB: predicated region body
PF: predicated region fallthrough
CT: control target
= control target key end

     0   :  { %16 = vsyncpa [#allocation4], 0  ;;  %s1925_s0 = inlined_call_operand.vmem [shape: f32[2,18,1], index: 0, kind: input, shape index: {}]   ;;  %s1926_s1 = inlined_call_operand.vmem [shape: f32[3,1,16], index: 1, kind: input, shape index: {}]   ;;  %s1927_s2 = inlined_call_operand.vmem [shape: f32[1,16], index: 2, kind: input, shape index: {}]   ;;  %s1928_s3 = inlined_call_operand.hbm [shape: f32[3,16,32], index: 3, kind: input, shape index: {}]   ;;  %s1929_s4 = inlined_call_operand.vmem [shape: f32[1,32], index: 4, kind: input, shape index: {}]   ;;  %s1930_s5 = inlined_call_operand.vmem [shape: f32[128,128], index: 5, kind: input, shape index: {}]   ;;  %s1931_s6 = inlined_call_operand.vmem [shape: f32[1,128], index: 6, kind: input, shape index: {}]   ;;  %s1932_s7 = inlined_call_operand.vmem [shape: f32[128,64], index: 7, kind: input, shape index: {}]   ;;  %s1933_s8 = inlined_call_operand.vmem [shape: f32[1,64], index: 8, kind: input, shape index: {}]   ;;  %s1934_s9 = inlined_call_operand.vmem [shape: f32[64,128], index: 9, kind: input, shape index: {}]   ;;  %s1935_s10 = inlined_call_operand.vmem [shape: f32[1,128], index: 10, kind: input, shape index: {}]   ;;  %s1936_s11 = inlined_call_operand.hbm [shape: f32[2,128], index: 11, kind: output, shape index: {}]  }
   0x1   :  { %17 = vsyncpa [#allocation5], 0  ;;  %s1538_s17 = smov [#allocation3]   ;;  %s1490_s21 = scalar_lea.hbm %s1928_s3, 768 }
   0x2   :  { %s29_s18 = sshll.u32 %s1538_s17, 4  ;;  %p1491_p0 = scmp.ne.s32.totalorder %s1928_s3, %s1490_s21  ;;  %s30_s18 = int_to_ptr.vmem [resolvable:$true] %s29_s18 }
   0x3   :  { %p1494_p1 = scmp.lt.u32.totalorder %s1490_s21, %s1928_s3 }
   0x5   :  { %p1496_p2 = pnand %p1494_p1, %p1491_p0 }
   0x7   :  { %1499 = shalt.err (!%p1496_p2)
}
   0x8   :  { %s1500_s26 = scalar_lea.vmem %s30_s18, 768  ;;  %p1505_p4 = scmp.lt.s32.totalorder %s30_s18, %s30_s18 }
   0x9   :  { %p1501_p3 = scmp.ne.s32.totalorder %s30_s18, %s1500_s26  ;;  %p1506_p5 = scmp.lt.s32.totalorder %s1500_s26, %s1500_s26 }
   0xb   :  { %p1507_p6 = por %p1506_p5, %p1505_p4 }
   0xd   :  { %p1508_p7 = pnand %p1507_p6, %p1501_p3 }
   0xf   :  { %1511 = shalt.err (!%p1508_p7)
}
  0x10   :  { %s1539_s27 = smov 128   ;;  %s1540_s28 = smov 8  }
  0x11   :  { %35 = dma.hbm_to_vmem [thread:$0]  %s1928_s3, 768, %s30_s18, [#allocation4], %s1539_s27, %s1539_s27, %s1540_s28  }
  0x12   :  { %1534 = dma.done.wait [#allocation4], 768  }
  0x13   :  { %1535 = vsyncadd [#allocation4], 4294966528  ;;  %v1541_v0 = vmov 0   ;;  %v65_v1 = vld [vmem:[%s1925_s0 + $0x18] sm:$0xff]  ;;  %v62_v2 = vld [vmem:[%s1925_s0] sm:$0xff]  ;;  %vm349_vm0 = vcmask 122880   ;;  %v205_v18 = vlaneseq }
  0x14   :  { %1489 = vset.pattern.permute.xlu1 %v1541_v0  ;;  %1488 = vset.pattern.permute.xlu0 %v1541_v0  ;;  %v66_v3 = vld [vmem:[%s1925_s0 + $0x20] sm:$0xff]  ;;  %v63_v4 = vld [vmem:[%s1925_s0 + $0x8] sm:$0xff]  ;;  %v64_v6 = vld [vmem:[%s1925_s0 + $0x10] sm:$0x3]  ;;  %v1542_v10 = vmov 0.0   ;;  %vm126_vm1 = vcmask 1046528  }
  0x15   :  { %80 = vperm.xlu1 %1489, %v65_v1   ;;  %70 = vperm.xlu0 %1488, %v62_v2   ;;  %v67_v5 = vld [vmem:[%s1925_s0 + $0x28] sm:$0x3]  ;;  %v58_v7 = vld [vmem:[#allocation3 + $0x10] sm:$0xff]  ;;  %v59_v8 = vld [vmem:[#allocation3 + $0x18] sm:$0xff]  ;;  %350 = vst.msk [vmem:[#allocation2] sm:$0x1] %vm349_vm0, %v1542_v10 }
  0x16   :  { %v1399_v9 = vpack.c.bf16 %v59_v8, %v58_v7  ;;  %352 = vst.msk [vmem:[#allocation2 + $0x9] sm:$0x1] %vm349_vm0, %v1542_v10  ;;  %351 = vst.msk [vmem:[#allocation2 + $0x10] sm:$0x1] %vm349_vm0, %v1542_v10  ;;  %v56_v11 = vld [vmem:[#allocation3] sm:$0xff]  ;;  %v57_v12 = vld [vmem:[#allocation3 + $0x8] sm:$0xff] }
  0x17   :  { %353 = vst.msk [vmem:[#allocation2 + $0x19] sm:$0x1] %vm349_vm0, %v1542_v10  ;;  %v1645_v13 = vpack.c.bf16 %v57_v12, %v56_v11  ;;  %v1196_v15 = vld [vmem:[%s1926_s1 + $0x1] ss:$0 sm:$0xff]  ;;  %v1197_v17 = vld [vmem:[%s1926_s1 + $0x2] ss:$0 sm:$0xff] }
  0x18   :  { %1400 = vmatprep.subr.bf16.mxu0 %v1399_v9  ;;  %v1543_v19 = vmov 1983009808   ;;  %v1195_v21 = vld [vmem:[%s1926_s1] ss:$0 sm:$0xff]  ;;  %vm163_vm2 = vcmask 1045504   ;;  %v1657_v28 = vshrl.u32 %v205_v18, 7 }
  0x19   :  { %85 = vperm.xlu1 %1489, %v66_v3   ;;  %75 = vperm.xlu0 %1488, %v63_v4   ;;  %v203_v20 = vunpack.c.l.s4 %v1543_v19  ;;  %v1198_v53 = vld [vmem:[%s1927_s2] ss:$0 sm:$0xff]  ;;  %vm434_vm3 = vcmask 1041409   ;;  %vm436_vm4 = vcmask 1042434   ;;  %vm438_vm5 = vcmask 1043459   ;;  %s1547_s1 = smov 32  }
  0x1a   :  { %1402 = vmatpush3.bf16.msra.mxu0 %v1399_v9  ;;  %v1675_v19 = vsub.s32 0, %v1657_v28  ;;  %vm440_vm6 = vcmask 1044484   ;;  %vm442_vm7 = vcmask 1045509   ;;  %vm444_vm8 = vcmask 1046534   ;;  %s1548_s28 = smov 64   ;;  %s1549_s13 = smov 96  }
  0x1b   :  { %1404 = vmatprep.subr.bf16.mxu0 %v1645_v13  ;;  %v204_v32 = vunpack.c.0.s8 %v203_v20  ;;  %vm446_vm9 = vcmask 1047559   ;;  %vm457_vm10 = vcmask 130048   ;;  %vm1546_vm11 = vmmov 0   ;;  %s1550_s22 = smov [#allocation6]  }
  0x1c   :  { %1342 = vmatprep.mubr.msk.f32.mxu1 %vm1546_vm11, %v1542_v10  ;;  %vm897_vm12 = vcmask 261120   ;;  %vm899_vm13 = vcmask 523264   ;;  %vm901_vm14 = vcmask 785408   ;;  %s1186_s0 = sshll.u32 %s1550_s22, 4  ;;  %s1187_s0 = int_to_ptr.vmem [resolvable:$true] %s1186_s0 }
  0x1d   :  { %105 = vperm.xlu1 %1489, %v67_v5   ;;  %100 = vperm.xlu0 %1488, %v64_v6   ;;  %v1668_v2 = vsub.s32 %v204_v32, %v1657_v28  ;;  %p1517_p9 = scmp.lt.s32.totalorder %s1187_s0, %s1187_s0 }
  0x94   :  { %v81_v14 = vpop.permute.xlu1 %80  ;;  %v71_v16 = vpop.permute.xlu0 %70 }
  0x95   :  { %v117_v22 = vmul.f32 %v1196_v15, %v81_v14  ;;  %v154_v23 = vmul.f32 %v1197_v17, %v81_v14  ;;  %v114_v24 = vmul.f32 %v1196_v15, %v71_v16  ;;  %v151_v27 = vmul.f32 %v1197_v17, %v71_v16 }
  0x96   :  { %v96_v31 = vmul.f32 %v1195_v21, %v81_v14  ;;  %v94_v36 = vmul.f32 %v1195_v21, %v71_v16 }
  0x97   :  { %v132_v35 = vrot.slane %v117_v22, 1  ;;  %v169_v39 = vrot.slane %v154_v23, 2  ;;  %v127_v40 = vrot.slane %v114_v24, 1  ;;  %v164_v45 = vrot.slane %v151_v27, 2 }
  0x98   :  { %v86_v25 = vpop.permute.xlu1 %85  ;;  %v76_v26 = vpop.permute.xlu0 %75 }
  0x99   :  { %v118_v29 = vmul.f32 %v1196_v15, %v86_v25  ;;  %v155_v30 = vmul.f32 %v1197_v17, %v86_v25  ;;  %v115_v33 = vmul.f32 %v1196_v15, %v76_v26  ;;  %v152_v34 = vmul.f32 %v1197_v17, %v76_v26 }
  0x9a   :  { %v97_v58 = vmul.f32 %v1195_v21, %v86_v25  ;;  %v95_v62 = vmul.f32 %v1195_v21, %v76_v26 }
  0x9b   :  { %v133_v37 = vrot.slane %v118_v29, 1  ;;  %v170_v38 = vrot.slane %v155_v30, 2  ;;  %v128_v41 = vrot.slane %v115_v33, 1  ;;  %v165_v42 = vrot.slane %v152_v34, 2 }
  0x9c   :  { %v106_v43 = vpop.permute.xlu1 %105  ;;  %v101_v44 = vpop.permute.xlu0 %100 }
  0x9d   :  { %v134_v46 = vsel %vm126_vm1, %v132_v35, %v133_v37  ;;  %v119_v47 = vmul.f32 %v1196_v15, %v106_v43  ;;  %v156_v48 = vmul.f32 %v1197_v17, %v106_v43  ;;  %v171_v50 = vsel %vm163_vm2, %v169_v39, %v170_v38 }
  0x9e   :  { %v143_v49 = vadd.f32 %v134_v46, %v96_v31  ;;  %v129_v51 = vsel %vm126_vm1, %v127_v40, %v128_v41  ;;  %v116_v52 = vmul.f32 %v1196_v15, %v101_v44  ;;  %v153_v57 = vmul.f32 %v1197_v17, %v101_v44 }
  0x9f   :  { %v141_v54 = vadd.f32 %v129_v51, %v94_v36  ;;  %v135_v55 = vrot.slane %v119_v47, 1  ;;  %v172_v56 = vrot.slane %v156_v48, 2  ;;  %v166_v60 = vsel %vm163_vm2, %v164_v45, %v165_v42 }
  0xa0   :  { %v180_v59 = vadd.f32 %v171_v50, %v143_v49  ;;  %v130_v61 = vrot.slane %v116_v52, 1  ;;  %v167_v1 = vrot.slane %v153_v57, 2 }
  0xa1   :  { %v178_v63 = vadd.f32 %v166_v60, %v141_v54  ;;  %v136_v0 = vsel %vm126_vm1, %v133_v37, %v135_v55  ;;  %v173_v7 = vsel %vm163_vm2, %v170_v38, %v172_v56 }
  0xa2   :  { %v191_v3 = vadd.f32 %v1198_v53, %v180_v59  ;;  %v144_v4 = vadd.f32 %v136_v0, %v97_v58  ;;  %v131_v5 = vsel %vm126_vm1, %v128_v41, %v130_v61  ;;  %v168_v12 = vsel %vm163_vm2, %v165_v42, %v167_v1 }
  0xa3   :  { %v189_v6 = vadd.f32 %v1198_v53, %v178_v63  ;;  %v142_v8 = vadd.f32 %v131_v5, %v95_v62 }
  0xa4   :  { %v195_v9 = vmax.f32 %v191_v3, 0.0  ;;  %v181_v11 = vadd.f32 %v173_v7, %v144_v4 }
  0xa5   :  { %v193_v14 = vmax.f32 %v189_v6, 0.0  ;;  %v179_v15 = vadd.f32 %v168_v12, %v142_v8 }
  0xa6   :  { %v235_v16 = vcombine.high %v195_v9, %v195_v9  ;;  %v242_v17 = vrot.slane %v195_v9, %v1668_v2  ;;  %v192_v18 = vadd.f32 %v1198_v53, %v181_v11 }
  0xa7   :  { %v201_v20 = vcombine.high %v193_v14, %v193_v14  ;;  %v208_v21 = vrot.slane %v193_v14, %v1668_v2  ;;  %v190_v22 = vadd.f32 %v1198_v53, %v179_v15 }
  0xa8   :  { %v249_v23 = vrot.slane %v235_v16, %v1668_v2  ;;  %v250_v24 = vcombine.high %v242_v17, %v242_v17  ;;  %v1207_v25 = vrot.slane %v242_v17, 9  ;;  %v196_v26 = vmax.f32 %v192_v18, 0.0 }
  0xa9   :  { %v215_v27 = vrot.slane %v201_v20, %v1668_v2  ;;  %v216_v29 = vcombine.high %v208_v21, %v208_v21  ;;  %v1199_v30 = vrot.slane %v208_v21, 9  ;;  %v194_v31 = vmax.f32 %v190_v22, 0.0 }
  0xaa   :  { %v251_v32 = vcombine.high %v249_v23, %v249_v23  ;;  %v1208_v33 = vrot.slane %v250_v24, 9  ;;  %v1209_v34 = vrot.slane %v249_v23, 9  ;;  %v341_v35 = vmax.f32 %v242_v17, %v1207_v25 }
  0xab   :  { %v217_v36 = vcombine.high %v215_v27, %v215_v27  ;;  %v1200_v37 = vrot.slane %v216_v29, 9  ;;  %v1201_v38 = vrot.slane %v215_v27, 9  ;;  %v333_v39 = vmax.f32 %v208_v21, %v1199_v30 }
  0xac   :  { %v1210_v40 = vrot.slane %v251_v32, 9  ;;  %v342_v41 = vmax.f32 %v250_v24, %v1208_v33  ;;  %v343_v42 = vmax.f32 %v249_v23, %v1209_v34  ;;  %v405_v43 = vrot.slane %v341_v35, %v1675_v19 }
  0xad   :  { %v1202_v44 = vrot.slane %v217_v36, 9  ;;  %v334_v45 = vmax.f32 %v216_v29, %v1200_v37  ;;  %v335_v46 = vmax.f32 %v215_v27, %v1201_v38  ;;  %v373_v47 = vrot.slane %v333_v39, %v1675_v19 }
  0xae   :  { %v344_v48 = vmax.f32 %v251_v32, %v1210_v40  ;;  %v409_v49 = vrot.slane %v342_v41, %v1675_v19  ;;  %v413_v50 = vrot.slane %v343_v42, %v1675_v19  ;;  %v252_v51 = vcombine.high %v196_v26, %v196_v26 }
  0xaf   :  { %v336_v52 = vmax.f32 %v217_v36, %v1202_v44  ;;  %v377_v53 = vrot.slane %v334_v45, %v1675_v19  ;;  %v381_v54 = vrot.slane %v335_v46, %v1675_v19  ;;  %v259_v55 = vrot.slane %v196_v26, %v1668_v2 }
  0xb0   :  { %v417_v56 = vrot.slane %v344_v48, %v1675_v19  ;;  %v448_v57 = vsel %vm434_vm3, %v409_v49, %v405_v43  ;;  %v266_v58 = vrot.slane %v252_v51, %v1668_v2  ;;  %v218_v59 = vcombine.high %v194_v31, %v194_v31  ;;  %v60_v49 = vld [vmem:[#allocation3 + $0x20] sm:$0xff] }
  0xb1   :  { %v449_v60 = vsel %vm436_vm4, %v413_v50, %v448_v57  ;;  %v435_v61 = vsel %vm434_vm3, %v377_v53, %v373_v47  ;;  %v267_v62 = vcombine.high %v259_v55, %v259_v55  ;;  %v385_v63 = vrot.slane %v336_v52, %v1675_v19 }
  0xb2   :  { %v268_v0 = vcombine.high %v266_v58, %v266_v58  ;;  %v1211_v1 = vrot.slane %v259_v55, 9  ;;  %v1213_v3 = vrot.slane %v266_v58, 9  ;;  %v437_v4 = vsel %vm436_vm4, %v381_v54, %v435_v61 }
  0xb3   :  { %v1212_v5 = vrot.slane %v267_v62, 9  ;;  %v225_v6 = vrot.slane %v194_v31, %v1668_v2  ;;  %v232_v7 = vrot.slane %v218_v59, %v1668_v2  ;;  %v450_v12 = vsel %vm438_vm5, %v417_v56, %v449_v60 }
  0xb4   :  { %v1214_v8 = vrot.slane %v268_v0, 9  ;;  %v345_v9 = vmax.f32 %v259_v55, %v1211_v1  ;;  %v347_v11 = vmax.f32 %v266_v58, %v1213_v3  ;;  %v439_v31 = vsel %vm438_vm5, %v385_v63, %v437_v4  ;;  %v904_v63 = vld [vmem:[%s1930_s5 + $0x8] sm:$0xff]  ;;  %v906_v4 = vld [vmem:[%s1930_s5 + $0x18] sm:$0xff] }
  0xb5   :  { %v346_v14 = vmax.f32 %v267_v62, %v1212_v5  ;;  %v233_v15 = vcombine.high %v225_v6, %v225_v6  ;;  %v234_v16 = vcombine.high %v232_v7, %v232_v7  ;;  %v1203_v17 = vrot.slane %v225_v6, 9 }
  0xb6   :  { %v348_v18 = vmax.f32 %v268_v0, %v1214_v8  ;;  %v421_v20 = vrot.slane %v345_v9, %v1675_v19  ;;  %v429_v21 = vrot.slane %v347_v11, %v1675_v19  ;;  %v1205_v22 = vrot.slane %v232_v7, 9  ;;  %v905_v0 = vld [vmem:[%s1930_s5 + $0x10] sm:$0xff]  ;;  %v910_v11 = vld [vmem:[%s1930_s5 + $0x38] sm:$0xff] }
  0xb7   :  { %v425_v23 = vrot.slane %v346_v14, %v1675_v19  ;;  %v1204_v24 = vrot.slane %v233_v15, 9  ;;  %v1206_v25 = vrot.slane %v234_v16, 9  ;;  %v337_v26 = vmax.f32 %v225_v6, %v1203_v17  ;;  %v907_v6 = vld [vmem:[%s1930_s5 + $0x20] sm:$0xff]  ;;  %v909_v9 = vld [vmem:[%s1930_s5 + $0x30] sm:$0xff] }
  0xb8   :  { %v433_v27 = vrot.slane %v348_v18, %v1675_v19  ;;  %v451_v29 = vsel %vm440_vm6, %v421_v20, %v450_v12  ;;  %v339_v30 = vmax.f32 %v232_v7, %v1205_v22  ;;  %v1544_v1 = vmov 0.0|0.0   ;;  %v908_v7 = vld [vmem:[%s1930_s5 + $0x28] sm:$0xff]  ;;  %v911_v14 = vld [vmem:[%s1930_s5 + $0x40] sm:$0xff]  ;;  %v913_v17 = vld [vmem:[%s1930_s5 + $0x50] sm:$0xff] }
  0xb9   :  { %v452_v32 = vsel %vm442_vm7, %v425_v23, %v451_v29  ;;  %v338_v33 = vmax.f32 %v233_v15, %v1204_v24  ;;  %v340_v34 = vmax.f32 %v234_v16, %v1206_v25  ;;  %v389_v35 = vrot.slane %v337_v26, %v1675_v19  ;;  %1411 = vmatprep.subr.bf16.mxu1 %v1544_v1  ;;  %v912_v15 = vld [vmem:[%s1930_s5 + $0x48] sm:$0xff]  ;;  %v914_v18 = vld [vmem:[%s1930_s5 + $0x58] sm:$0xff]  ;;  %v1221_v24 = vld [vmem:[%s1929_s4] ss:$0 sm:$0xff] }
  0xba   :  { %v453_v36 = vsel %vm444_vm8, %v429_v21, %v452_v32  ;;  %v397_v37 = vrot.slane %v339_v30, %v1675_v19  ;;  %v1415_v5 = vpack.c.bf16 %v906_v4, %v905_v0  ;;  %v1418_v8 = vpack.c.bf16 %v908_v7, %v907_v6  ;;  %v915_v21 = vld [vmem:[%s1930_s5 + $0x60] sm:$0xff]  ;;  %v916_v22 = vld [vmem:[%s1930_s5 + $0x68] sm:$0xff] }
  0xbb   :  { %v454_v38 = vsel %vm446_vm9, %v433_v27, %v453_v36  ;;  %v393_v39 = vrot.slane %v338_v33, %v1675_v19  ;;  %v401_v40 = vrot.slane %v340_v34, %v1675_v19  ;;  %v441_v41 = vsel %vm440_vm6, %v389_v35, %v439_v31  ;;  %v61_v19 = vld [vmem:[#allocation3 + $0x28] sm:$0xff] }
  0xbc   :  { %459 = vst.msk [vmem:[#allocation2 + $0x11] sm:$0xff] %vm457_vm10, %v454_v38  ;;  %v1407_v56 = vpack.c.bf16 %v61_v19, %v60_v49  ;;  %v1421_v12 = vpack.c.bf16 %v910_v11, %v909_v9  ;;  %v1424_v16 = vpack.c.bf16 %v912_v15, %v911_v14  ;;  %v1427_v20 = vpack.c.bf16 %v914_v18, %v913_v17 }
  0xbd   :  { %v443_v42 = vsel %vm442_vm7, %v393_v39, %v441_v41  ;;  %v1430_v23 = vpack.c.bf16 %v916_v22, %v915_v21 }
  0xbe   :  { %v445_v43 = vsel %vm444_vm8, %v397_v37, %v443_v42 }
  0xbf   :  { %v447_v44 = vsel %vm446_vm9, %v401_v40, %v445_v43  ;;  %v1545_v43 = vmov 1934713408  }
  0xc0   :  { %458 = vst.msk [vmem:[#allocation2 + $0x1] sm:$0xff] %vm457_vm10, %v447_v44  ;;  %v848_v44 = vunpack.c.l.s4 %v1545_v43 }
  0xc3   :  { %v462_v45 = vld [vmem:[#allocation2 + $0x10] sm:$0xff]  ;;  %v463_v46 = vld [vmem:[#allocation2 + $0x18] sm:$0x3] }
  0xc4   :  { %v471_v47 = vrot.slane %v462_v45, 1  ;;  %v472_v48 = vrot.slane %v463_v46, 1  ;;  %v636_v60 = vrot.slane %v463_v46, 2  ;;  %v635_v61 = vrot.slane %v462_v45, 2 }
  0xc6   :  { %v473_v54 = vsel %vm126_vm1, %v471_v47, %v472_v48  ;;  %v637_v62 = vsel %vm163_vm2, %v635_v61, %v636_v60  ;;  %v917_v60 = vld [vmem:[%s1930_s5 + $0x70] sm:$0xff]  ;;  %v918_v61 = vld [vmem:[%s1930_s5 + $0x78] sm:$0xff] }
  0xc7   :  { %v460_v50 = vld [vmem:[#allocation2] sm:$0xff]  ;;  %v461_v51 = vld [vmem:[#allocation2 + $0x8] sm:$0x3]  ;;  %v1433_v0 = vpack.c.bf16 %v918_v61, %v917_v60 }
  0xc8   :  { %v468_v52 = vrot.slane %v460_v50, 1  ;;  %v469_v53 = vrot.slane %v461_v51, 1  ;;  %v633_v57 = vrot.slane %v461_v51, 2  ;;  %v632_v58 = vrot.slane %v460_v50, 2  ;;  %v1091_v61 = vld [vmem:[%s1934_s9] sm:$0xff] }
  0xca   :  { %v470_v55 = vsel %vm126_vm1, %v468_v52, %v469_v53  ;;  %v634_v59 = vsel %vm163_vm2, %v632_v58, %v633_v57 }
  0xcb   :  { %1293 = vmatprep.mubr.msk.f32.mxu0 %vm457_vm10, %v470_v55 }
  0xcc   :  { %1294 = vmatmul.mubr.msk.f32.vlgmr.msra.gmra.mrb[0].mxu0 %vm457_vm10, %v473_v54 }
  0xcd   :  { %1406 = vmatpush3.bf16.msra.mxu0 %v1645_v13  ;;  %1300 = vmatprep.mubr.msk.f32.mxu0 %vm457_vm10, %v460_v50  ;;  %v903_v13 = vld [vmem:[%s1930_s5] sm:$0xff] }
  0xce   :  { %1408 = vmatprep.subr.bf16.mxu0 %v1407_v56  ;;  %v1412_v3 = vpack.c.bf16 %v904_v63, %v903_v13 }
  0xd0   :  { %1413 = vmatpush3.bf16.msra.mxu1 %v1412_v3 }
  0xd1   :  { %1414 = vmatprep.subr.bf16.mxu1 %v1544_v1 }
  0xd4   :  { %1301 = vmatmul.mubr.msk.f32.vlgmr.msra.gmra.mrb[0].mxu0 %vm457_vm10, %v462_v45  ;;  %1416 = vmatpush3.bf16.msra.mxu1 %v1415_v5 }
  0xd5   :  { %1410 = vmatpush3.bf16.msra.mxu0 %v1407_v56  ;;  %1307 = vmatprep.mubr.msk.f32.mxu0 %vm457_vm10, %v634_v59  ;;  %v849_v56 = vunpack.c.0.s8 %v848_v44 }
  0xd6   :  { %1435 = vmatprep.subr.bf16.mxu0 %v1544_v1  ;;  %1417 = vmatprep.subr.bf16.mxu1 %v1544_v1 }
  0xd7   :  { %v852_v11 = vsub.s32 %v849_v56, %v1657_v28 }
  0xd8   :  { %1419 = vmatpush3.bf16.msra.mxu1 %v1418_v8 }
  0xd9   :  { %1420 = vmatprep.subr.bf16.mxu1 %v1544_v1 }
  0xdc   :  { %1308 = vmatmul.mubr.msk.f32.vlgmr.msra.gmra.mrb[0].mxu0 %vm457_vm10, %v637_v62  ;;  %1422 = vmatpush3.bf16.msra.mxu1 %v1421_v12 }
  0xdd   :  { %1423 = vmatprep.subr.bf16.mxu1 %v1544_v1  ;;  %1377 = vmatprep.mubr.msk.f32.mxu0 %vm1546_vm11, %v1542_v10 }
  0xe0   :  { %1425 = vmatpush3.bf16.msra.mxu1 %v1424_v16 }
  0xe1   :  { %1426 = vmatprep.subr.bf16.mxu1 %v1544_v1 }
  0xe4   :  { %1428 = vmatpush3.bf16.msra.mxu1 %v1427_v20 }
  0xe5   :  { %1429 = vmatprep.subr.bf16.mxu1 %v1544_v1 }
  0xe8   :  { %1431 = vmatpush3.bf16.msra.mxu1 %v1430_v23  ;;  %v997_v23 = vld [vmem:[%s1932_s7] sm:$0xff] }
  0xe9   :  { %1432 = vmatprep.subr.bf16.mxu1 %v1544_v1 }
  0xec   :  { %1434 = vmatpush3.bf16.msra.mxu1 %v1433_v0 }
  0xed   :  { %1459 = vmatprep.subr.bf16.mxu1 %v1544_v1 }
 0x1af   :  { %v1309_v25 = vpop.f32.mrb[0].mxu0 }
 0x1b0   :  { %v727_v26 = vadd.f32 %v1309_v25, %v1221_v24  ;;  %v708_v27 = vpop.f32.mrb[1].mxu0  ;;  %v999_v25 = vld [vmem:[%s1932_s7 + $0x10] sm:$0xff] }
 0x1b1   :  { %v726_v29 = vadd.f32 %v1221_v24, %v708_v27  ;;  %v998_v24 = vld [vmem:[%s1932_s7 + $0x8] sm:$0xff] }
 0x1b2   :  { %v729_v30 = vmax.f32 %v727_v26, 0.0  ;;  %v1436_v27 = vpack.c.bf16 %v998_v24, %v997_v23 }
 0x1b3   :  { %v728_v31 = vmax.f32 %v726_v29, 0.0  ;;  %v1000_v29 = vld [vmem:[%s1932_s7 + $0x18] sm:$0xff] }
 0x1b4   :  { %v749_v32 = vcombine.high %v729_v30, %v729_v30  ;;  %v756_v33 = vrot.slane %v729_v30, %v1668_v2  ;;  %1437 = vmatpush3.bf16.msra.mxu0 %v1436_v27 }
 0x1b5   :  { %v732_v34 = vcombine.high %v728_v31, %v728_v31  ;;  %v739_v35 = vrot.slane %v728_v31, %v1668_v2  ;;  %1438 = vmatprep.subr.bf16.mxu0 %v1544_v1 }
 0x1b6   :  { %v763_v36 = vrot.slane %v749_v32, %v1668_v2  ;;  %v764_v37 = vcombine.high %v756_v33, %v756_v33  ;;  %v1226_v41 = vrot.slane %v756_v33, 9  ;;  %v1439_v32 = vpack.c.bf16 %v1000_v29, %v999_v25 }
 0x1b7   :  { %v746_v38 = vrot.slane %v732_v34, %v1668_v2  ;;  %v747_v39 = vcombine.high %v739_v35, %v739_v35  ;;  %v1222_v46 = vrot.slane %v739_v35, 9 }
 0x1b8   :  { %v765_v40 = vcombine.high %v763_v36, %v763_v36  ;;  %v1227_v42 = vrot.slane %v764_v37, 9  ;;  %v1228_v48 = vrot.slane %v763_v36, 9  ;;  %v802_v53 = vmax.f32 %v756_v33, %v1226_v41  ;;  %1440 = vmatpush3.bf16.msra.mxu0 %v1439_v32  ;;  %v1003_v41 = vld [vmem:[%s1932_s7 + $0x30] sm:$0xff] }
 0x1b9   :  { %v748_v45 = vcombine.high %v746_v38, %v746_v38  ;;  %v1223_v47 = vrot.slane %v747_v39, 9  ;;  %v1224_v51 = vrot.slane %v746_v38, 9  ;;  %v798_v57 = vmax.f32 %v739_v35, %v1222_v46  ;;  %v1001_v35 = vld [vmem:[%s1932_s7 + $0x20] sm:$0xff]  ;;  %1441 = vmatprep.subr.bf16.mxu0 %v1544_v1  ;;  %v1006_v46 = vld [vmem:[%s1932_s7 + $0x48] sm:$0xff] }
 0x1ba   :  { %v1229_v49 = vrot.slane %v765_v40, 9  ;;  %v803_v50 = vmax.f32 %v764_v37, %v1227_v42  ;;  %v804_v62 = vmax.f32 %v763_v36, %v1228_v48  ;;  %v1002_v36 = vld [vmem:[%s1932_s7 + $0x28] sm:$0xff]  ;;  %v1004_v42 = vld [vmem:[%s1932_s7 + $0x38] sm:$0xff] }
 0x1bb   :  { %v1225_v19 = vrot.slane %v748_v45, 9  ;;  %v799_v52 = vmax.f32 %v747_v39, %v1223_v47  ;;  %v800_v4 = vmax.f32 %v746_v38, %v1224_v51  ;;  %v1445_v44 = vpack.c.bf16 %v1004_v42, %v1003_v41  ;;  %v1008_v48 = vld [vmem:[%s1932_s7 + $0x58] sm:$0xff]  ;;  %v1010_v51 = vld [vmem:[%s1932_s7 + $0x68] sm:$0xff] }
 0x1bc   :  { %v805_v54 = vmax.f32 %v765_v40, %v1229_v49  ;;  %v830_v55 = vrot.slane %v803_v50, 7  ;;  %v1442_v40 = vpack.c.bf16 %v1002_v36, %v1001_v35  ;;  %v1009_v50 = vld [vmem:[%s1932_s7 + $0x60] sm:$0xff] }
 0x1bd   :  { %v801_v58 = vmax.f32 %v748_v45, %v1225_v19  ;;  %v816_v59 = vrot.slane %v799_v52, 7  ;;  %v1005_v45 = vld [vmem:[%s1932_s7 + $0x40] sm:$0xff]  ;;  %v1454_v19 = vpack.c.bf16 %v1010_v51, %v1009_v50 }
 0x1be   :  { %v831_v13 = vsel %vm434_vm3, %v830_v55, %v802_v53  ;;  %v837_v63 = vrot.slane %v805_v54, 7  ;;  %1443 = vmatpush3.bf16.msra.mxu0 %v1442_v40  ;;  %v1448_v47 = vpack.c.bf16 %v1006_v46, %v1005_v45 }
 0x1bf   :  { %v832_v3 = vsel %vm438_vm5, %v830_v55, %v831_v13  ;;  %v817_v5 = vsel %vm434_vm3, %v816_v59, %v798_v57  ;;  %v823_v6 = vrot.slane %v801_v58, 7  ;;  %1444 = vmatprep.subr.bf16.mxu0 %v1544_v1  ;;  %v1011_v58 = vld [vmem:[%s1932_s7 + $0x70] sm:$0xff] }
 0x1c0   :  { %v838_v7 = vsel %vm434_vm3, %v837_v63, %v804_v62  ;;  %v818_v8 = vsel %vm438_vm5, %v816_v59, %v817_v5  ;;  %v833_v9 = vsel %vm442_vm7, %v830_v55, %v832_v3  ;;  %v1092_v62 = vld [vmem:[%s1934_s9 + $0x8] sm:$0xff]  ;;  %v1095_v3 = vld [vmem:[%s1934_s9 + $0x20] sm:$0xff] }
 0x1c1   :  { %v824_v12 = vsel %vm434_vm3, %v823_v6, %v800_v4  ;;  %v819_v14 = vsel %vm442_vm7, %v816_v59, %v818_v8  ;;  %v834_v15 = vsel %vm446_vm9, %v830_v55, %v833_v9  ;;  %v839_v16 = vsel %vm438_vm5, %v837_v63, %v838_v7  ;;  %v1096_v4 = vld [vmem:[%s1934_s9 + $0x28] sm:$0xff] }
 0x1c2   :  { %v820_v17 = vsel %vm446_vm9, %v816_v59, %v819_v14  ;;  %v825_v18 = vsel %vm438_vm5, %v823_v6, %v824_v12  ;;  %v840_v20 = vsel %vm442_vm7, %v837_v63, %v839_v16  ;;  %1446 = vmatpush3.bf16.msra.mxu0 %v1445_v44  ;;  %v1012_v59 = vld [vmem:[%s1932_s7 + $0x78] sm:$0xff]  ;;  %v1460_v13 = vpack.c.bf16 %v1092_v62, %v1091_v61  ;;  %v1097_v12 = vld [vmem:[%s1934_s9 + $0x30] sm:$0xff] }
 0x1c3   :  { %v846_v21 = vcombine.low %v820_v17, %v834_v15  ;;  %v826_v28 = vsel %vm442_vm7, %v823_v6, %v825_v18  ;;  %v841_v22 = vsel %vm446_vm9, %v837_v63, %v840_v20  ;;  %1447 = vmatprep.subr.bf16.mxu0 %v1544_v1  ;;  %v1457_v60 = vpack.c.bf16 %v1012_v59, %v1011_v58  ;;  %v1094_v63 = vld [vmem:[%s1934_s9 + $0x18] sm:$0xff] }
 0x1c4   :  { %v827_v26 = vsel %vm446_vm9, %v823_v6, %v826_v28  ;;  %v1466_v5 = vpack.c.bf16 %v1096_v4, %v1095_v3  ;;  %v1230_v6 = vld [vmem:[%s1931_s6] ss:$0 sm:$0xff]  ;;  %v1098_v14 = vld [vmem:[%s1934_s9 + $0x38] sm:$0xff] }
 0x1c5   :  { %v853_v30 = vrot.slane %v846_v21, %v852_v11  ;;  %v855_v31 = vcombine.low %v827_v26, %v841_v22  ;;  %v1469_v15 = vpack.c.bf16 %v1098_v14, %v1097_v12  ;;  %v1232_v21 = vld [vmem:[%s1935_s10] ss:$0 sm:$0xff] }
 0x1c6   :  { %1449 = vmatpush3.bf16.msra.mxu0 %v1448_v47 }
 0x1c7   :  { %v854_v33 = vcombine.high %v853_v30, %v1542_v10  ;;  %v862_v34 = vrot.slane %v855_v31, %v852_v11  ;;  %1450 = vmatprep.subr.bf16.mxu0 %v1544_v1 }
 0x1c9   :  { %v871_v37 = vrot.slane %v854_v33, %v1668_v2  ;;  %v882_v38 = vrot.slane %v862_v34, %v1668_v2  ;;  %v863_v39 = vcombine.high %v862_v34, %v1542_v10 }
 0x1cb   :  { %872 = vrot.lane.b32.xlu0 %v871_v37, %s1547_s1  ;;  %883 = vrot.lane.b32.xlu1 %v882_v38, %s1548_s28  ;;  %v893_v43 = vrot.slane %v863_v39, %v1668_v2  ;;  %v1007_v2 = vld [vmem:[%s1932_s7 + $0x50] sm:$0xff] }
 0x1cc   :  { %v1451_v49 = vpack.c.bf16 %v1008_v48, %v1007_v2 }
 0x1ce   :  { %1452 = vmatpush3.bf16.msra.mxu0 %v1451_v49 }
 0x1cf   :  { %894 = vrot.lane.b32.xlu0 %v893_v43, %s1549_s13  ;;  %1453 = vmatprep.subr.bf16.mxu0 %v1544_v1 }
 0x1d2   :  { %1455 = vmatpush3.bf16.msra.mxu0 %v1454_v19 }
 0x1d3   :  { %1456 = vmatprep.subr.bf16.mxu0 %v1544_v1 }
 0x1d6   :  { %1458 = vmatpush3.bf16.msra.mxu0 %v1457_v60 }
 0x23d   :  { %v873_v52 = vpop.permute.xlu0 %872  ;;  %v884_v54 = vpop.permute.xlu1 %883 }
 0x23e   :  { %v898_v53 = vsel %vm897_vm12, %v853_v30, %v873_v52 }
 0x23f   :  { %v900_v55 = vsel %vm899_vm13, %v898_v53, %v884_v54 }
 0x241   :  { %v895_v56 = vpop.permute.xlu0 %894 }
 0x242   :  { %v902_v57 = vsel %vm901_vm14, %v900_v55, %v895_v56 }
 0x243   :  { %1343 = vmatmul.mubr.f32.vlgmr.msra.gmra.mrb[0].mxu1 %v902_v57 }
 0x244   :  { %1396 = vmatprep.mubr.msk.f32.mxu1 %vm1546_vm11, %v1542_v10  ;;  %v1093_v10 = vld [vmem:[%s1934_s9 + $0x10] sm:$0xff]  ;;  %1461 = vmatpush3.bf16.msra.mxu1 %v1460_v13  ;;  %s1512_s9 = scalar_lea.vmem %s1187_s0, 32 }
 0x245   :  { %v1463_v0 = vpack.c.bf16 %v1094_v63, %v1093_v10  ;;  %1462 = vmatprep.subr.bf16.mxu1 %v1544_v1  ;;  %p1513_p8 = scmp.ne.s32.totalorder %s1187_s0, %s1512_s9  ;;  %p1518_p10 = scmp.lt.s32.totalorder %s1512_s9, %s1512_s9 }
 0x247   :  { %p1519_p11 = por %p1518_p10, %p1517_p9 }
 0x248   :  { %1464 = vmatpush3.bf16.msra.mxu1 %v1463_v0 }
 0x249   :  { %1465 = vmatprep.subr.bf16.mxu1 %v1544_v1  ;;  %p1520_p12 = pnand %p1519_p11, %p1513_p8 }
 0x24c   :  { %1467 = vmatpush3.bf16.msra.mxu1 %v1466_v5 }
 0x24d   :  { %1468 = vmatprep.subr.bf16.mxu1 %v1544_v1  ;;  %v1231_v1 = vld [vmem:[%s1933_s8] ss:$0 sm:$0xff] }
 0x250   :  { %1470 = vmatpush3.bf16.msra.mxu1 %v1469_v15 }
 0x316   :  { %v992_v7 = vpop.f32.mrb[0].mxu1 }
 0x317   :  { %v993_v8 = vadd.f32 %v1230_v6, %v992_v7  ;;  %v1344_v9 = vpop.f32.mrb[1].mxu1 }
 0x319   :  { %v996_v11 = vmax.f32 %v993_v8, 0.0 }
 0x31b   :  { %1378 = vmatmul.mubr.f32.vlgmr.msra.gmra.mrb[2].mxu0 %v996_v11 }
 0x3ee   :  { %v1086_v16 = vpop.f32.mrb[2].mxu0 }
 0x3ef   :  { %v1087_v17 = vadd.f32 %v1231_v1, %v1086_v16  ;;  %v1379_v18 = vpop.f32.mrb[3].mxu0 }
 0x3f1   :  { %v1090_v20 = vmax.f32 %v1087_v17, 0.0 }
 0x3f3   :  { %1397 = vmatmul.mubr.msk.f32.vlgmr.msra.gmra.mrb[2].mxu1 %vm899_vm13, %v1090_v20 }
 0x4c6   :  { %v1175_v28 = vpop.f32.mrb[2].mxu1 }
 0x4c7   :  { %v1176_v22 = vadd.f32 %v1232_v21, %v1175_v28  ;;  %v1398_v23 = vpop.f32.mrb[3].mxu1 }
 0x4c9   :  { %1179 = vst [vmem:[#allocation6] sm:$0x3] %v1176_v22 }
 0x4ca   :  { %1523 = shalt.err (!%p1520_p12)
}
 0x4cb   :  { %s1524_s24 = scalar_lea.hbm %s1936_s11, 32 }
 0x4cc   :  { %p1525_p13 = scmp.ne.s32.totalorder %s1936_s11, %s1524_s24  ;;  %p1528_p0 = scmp.lt.u32.totalorder %s1524_s24, %s1936_s11 }
 0x4ce   :  { %p1530_p1 = pnand %p1528_p0, %p1525_p13 }
 0x4d0   :  { %1533 = shalt.err (!%p1530_p1)
}
 0x4d1   :  { %1189 = dma.vmem_to_hbm [thread:$0]  %s1187_s0, 32, %s1936_s11, [#allocation5]  }
 0x4d2   :  { %1536 = dma.done.wait [#allocation5], 32  }
 0x4d3   :  { %1537 = vsyncadd [#allocation5], 4294967264 }
 0x4d4   :  { %1193 = vsyncpa [#allocation4], 1 }
 0x4d5   :  { %1194 = vsyncpa [#allocation5], 1 }

</bundles_post_ra>
